<compile_context>
chip_gen: v5e
topology: v5e:2x2
jax: 0.10.0
libtpu: 0.0.40
codegen_flags: <defaults>
</compile_context>

<pallas_src>
import functools

import jax
import jax.numpy as jnp
from jax.experimental import pallas as pl
from jax.experimental.pallas import tpu as pltpu

HIDDEN = 50
HIDDEN_PAD = 64          # 50 -> 64: zero-pad, mathematically identical
NUM_ACTIONS = 4


def _round_up(n, m):
    return (n + m - 1) // m * m


def mlp_kernel(x_ref, w1_ref, b1_ref, w2_ref, b2_ref, o_ref):
    # Two MXU matmuls + VPU bias/ReLU on VMEM-resident tiles; weights stay
    # resident across grid steps (constant index_maps), only x/out stream.
    x = x_ref[...]                                                # (TB, D)
    h = jnp.dot(x, w1_ref[...], preferred_element_type=jnp.float32)
    h = jnp.maximum(h + b1_ref[...], 0.0)                         # bias + ReLU
    out = jnp.dot(h.astype(w2_ref.dtype), w2_ref[...],
                  preferred_element_type=jnp.float32)
    o_ref[...] = (out + b2_ref[...]).astype(o_ref.dtype)


def pad_params(w1, b1, w2, b2):
    """Zero-pad the hidden dimension 50 -> 64 (exact; see header comment)."""
    pad_h = HIDDEN_PAD - w1.shape[1]
    w1p = jnp.pad(w1, ((0, 0), (0, pad_h)))
    b1p = jnp.pad(b1, ((0, 0), (0, pad_h)))
    w2p = jnp.pad(w2, ((0, pad_h), (0, 0)))
    return w1p, b1p, w2p, b2


@functools.partial(jax.jit, static_argnames=("block_b",))
def net_forward(x, w1p, b1p, w2p, b2, *, block_b=1024):
    """x: (B, ...) -> flattened to (B, D); returns (B, NUM_ACTIONS)."""
    B = x.shape[0]
    x2d = x.reshape(B, -1)                                        # nn.Flatten
    D = x2d.shape[1]

    # Batch tile: multiple of 8 sublanes, 512-2048 sweet spot, but capped so
    # the double-buffered x tile + out tile stay well inside v7x's 64 MiB VMEM
    # (and the 32 MiB scoped default). Weights are tiny and resident.
    bytes_per = jnp.dtype(x2d.dtype).itemsize
    budget_rows = max(8, (8 << 20) // (2 * bytes_per * (D + NUM_ACTIONS)))
    tb = min(block_b, budget_rows, max(8, _round_up(B, 8)))
    tb = max(8, (tb // 8) * 8)

    b_pad = _round_up(B, tb)
    if b_pad != B:
        x2d = jnp.pad(x2d, ((0, b_pad - B), (0, 0)))

    grid = (b_pad // tb,)

    out = pl.pallas_call(
        mlp_kernel,
        out_shape=jax.ShapeDtypeStruct((b_pad, NUM_ACTIONS), x2d.dtype),
        grid_spec=pltpu.PrefetchScalarGridSpec(
            num_scalar_prefetch=0,
            grid=grid,
            in_specs=[
                pl.BlockSpec((tb, D), lambda i: (i, 0)),                 # x: streamed
                pl.BlockSpec((D, HIDDEN_PAD), lambda i: (0, 0)),         # w1: resident
                pl.BlockSpec((1, HIDDEN_PAD), lambda i: (0, 0)),         # b1: resident
                pl.BlockSpec((HIDDEN_PAD, NUM_ACTIONS), lambda i: (0, 0)),  # w2: resident
                pl.BlockSpec((1, NUM_ACTIONS), lambda i: (0, 0)),        # b2: resident
            ],
            out_specs=pl.BlockSpec((tb, NUM_ACTIONS), lambda i: (i, 0)),
        ),
        compiler_params=pltpu.CompilerParams(
            # Batch axis is embarrassingly parallel -> v7x megacore sharding.
            dimension_semantics=("parallel",),
        ),
    )(x2d, w1p, b1p, w2p, b2)
    return out[:B]


def init_params(key, input_dim):
    # Deterministic synthetic init (PyTorch-style uniform(-1/sqrt(fan_in), +)),
    # stored as (D_in, D_out) so the kernel computes x @ W + b.
    k1, k2, k3, k4 = jax.random.split(key, 4)
    bound1 = 1.0 / jnp.sqrt(input_dim)
    bound2 = 1.0 / jnp.sqrt(HIDDEN)
    w1 = jax.random.uniform(k1, (input_dim, HIDDEN), jnp.float32, -bound1, bound1)
    b1 = jax.random.uniform(k2, (1, HIDDEN), jnp.float32, -bound1, bound1)
    w2 = jax.random.uniform(k3, (HIDDEN, NUM_ACTIONS), jnp.float32, -bound2, bound2)
    b2 = jax.random.uniform(k4, (1, NUM_ACTIONS), jnp.float32, -bound2, bound2)
    return w1, b1, w2, b2


if __name__ == "__main__":
    key = jax.random.PRNGKey(0)
    kx, kp = jax.random.split(key)

    # Small gridworld-style observation: batch=2, NCHW (2, 2, 4, 4) -> D=32.
    B = 2
    x = jax.random.normal(kx, (B, 2, 4, 4), jnp.float32)
    D = 2 * 4 * 4

    # Unpadded (reference) params, then zero-pad hidden 50->64 for the kernel.
    w1, b1, w2, b2 = init_params(kp, D)
    w1p, b1p, w2p, b2p = pad_params(w1, b1, w2, b2)

    out = net_forward(x, w1p, b1p, w2p, b2p)
    jax.block_until_ready(out)

    # Pure-JAX reference with the ORIGINAL (unpadded) weights: proves the
    # hidden-dim padding and batch padding are semantics-preserving.
    ref = jnp.maximum(x.reshape(B, -1) @ w1 + b1, 0.0) @ w2 + b2
    assert out.shape == (B, NUM_ACTIONS)
    assert jnp.allclose(out, ref, atol=1e-5, rtol=1e-5)

    # NOTE: at this demo size (B=2) pallas_call launch overhead dominates; the
    # tiling/pipelining above pays off when the caller batches many RL
    # observations into a single large-B net_forward call.
    print("KERNEL_OK")
</pallas_src>

<mosaic_0001>
module attributes {stable_mosaic.version = 11 : i64} {
  func.func @mlp_kernel(%arg0: i32, %arg1: memref<8x32xf32, #tpu.memory_space<vmem>>, %arg2: memref<32x64xf32, #tpu.memory_space<vmem>>, %arg3: memref<1x64xf32, #tpu.memory_space<vmem>>, %arg4: memref<64x4xf32, #tpu.memory_space<vmem>>, %arg5: memref<1x4xf32, #tpu.memory_space<vmem>>, %arg6: memref<8x4xf32, #tpu.memory_space<vmem>>) attributes {dimension_semantics = [#tpu.dimension_semantics<parallel>], iteration_bounds = array<i64: 1>, scalar_prefetch = 0 : i64, scratch_operands = 0 : i64, tpu.core_type = #tpu.core_type<tc>, window_params = [{transform_indices = @transform_0, window_bounds = array<i64: 8, 32>}, {pipeline_mode = #tpu.pipeline_mode<synchronous>, transform_indices = @transform_1, window_bounds = array<i64: 32, 64>}, {pipeline_mode = #tpu.pipeline_mode<synchronous>, transform_indices = @transform_2, window_bounds = array<i64: 1, 64>}, {pipeline_mode = #tpu.pipeline_mode<synchronous>, transform_indices = @transform_3, window_bounds = array<i64: 64, 4>}, {pipeline_mode = #tpu.pipeline_mode<synchronous>, transform_indices = @transform_4, window_bounds = array<i64: 1, 4>}, {transform_indices = @transform_5, window_bounds = array<i64: 8, 4>}]} {
    %c0 = arith.constant 0 : index
    %c0_0 = arith.constant 0 : index
    %0 = vector.load %arg1[%c0, %c0_0] : memref<8x32xf32, #tpu.memory_space<vmem>>, vector<8x32xf32>
    %c0_1 = arith.constant 0 : index
    %c0_2 = arith.constant 0 : index
    %1 = vector.load %arg2[%c0_1, %c0_2] : memref<32x64xf32, #tpu.memory_space<vmem>>, vector<32x64xf32>
    %cst = arith.constant dense<0.000000e+00> : vector<8x64xf32>
    %2 = tpu.matmul %0, %1, %cst {dimension_numbers = #tpu.dot_dimension_numbers<[1], [0], [0], [1], [0, 0, 1, 1], [], []>} : vector<8x32xf32>, vector<32x64xf32>, vector<8x64xf32> -> vector<8x64xf32>
    %c0_3 = arith.constant 0 : index
    %c0_4 = arith.constant 0 : index
    %3 = vector.load %arg3[%c0_3, %c0_4] : memref<1x64xf32, #tpu.memory_space<vmem>>, vector<1x64xf32>
    %4 = vector.broadcast %3 : vector<1x64xf32> to vector<8x64xf32>
    %5 = arith.addf %2, %4 : vector<8x64xf32>
    %cst_5 = arith.constant 0.000000e+00 : f32
    %6 = vector.broadcast %cst_5 : f32 to vector<8x64xf32>
    %7 = arith.maximumf %5, %6 : vector<8x64xf32>
    %c0_6 = arith.constant 0 : index
    %c0_7 = arith.constant 0 : index
    %8 = vector.load %arg4[%c0_6, %c0_7] : memref<64x4xf32, #tpu.memory_space<vmem>>, vector<64x4xf32>
    %cst_8 = arith.constant dense<0.000000e+00> : vector<8x4xf32>
    %9 = tpu.matmul %7, %8, %cst_8 {dimension_numbers = #tpu.dot_dimension_numbers<[1], [0], [0], [1], [0, 0, 1, 1], [], []>} : vector<8x64xf32>, vector<64x4xf32>, vector<8x4xf32> -> vector<8x4xf32>
    %c0_9 = arith.constant 0 : index
    %c0_10 = arith.constant 0 : index
    %10 = vector.load %arg5[%c0_9, %c0_10] : memref<1x4xf32, #tpu.memory_space<vmem>>, vector<1x4xf32>
    %11 = vector.broadcast %10 : vector<1x4xf32> to vector<8x4xf32>
    %12 = arith.addf %9, %11 : vector<8x4xf32>
    %c0_11 = arith.constant 0 : index
    %c0_12 = arith.constant 0 : index
    %13 = vector.load %arg6[%c0_11, %c0_12] : memref<8x4xf32, #tpu.memory_space<vmem>>, vector<8x4xf32>
    tpu.vector_store %arg6[%c0_11, %c0_12], %12 {strides = array<i32>} : memref<8x4xf32, #tpu.memory_space<vmem>>, vector<8x4xf32>,
    return
  }
  func.func @transform_0(%arg0: i32) -> (i32, i32) {
    %c0_i32 = arith.constant 0 : i32
    %c0_i32_0 = arith.constant 0 : i32
    return %arg0, %c0_i32 : i32, i32
  }
  func.func @transform_1(%arg0: i32) -> (i32, i32) {
    %c0_i32 = arith.constant 0 : i32
    %c0_i32_0 = arith.constant 0 : i32
    %c0_i32_1 = arith.constant 0 : i32
    return %c0_i32, %c0_i32_0 : i32, i32
  }
  func.func @transform_2(%arg0: i32) -> (i32, i32) {
    %c0_i32 = arith.constant 0 : i32
    %c0_i32_0 = arith.constant 0 : i32
    %c0_i32_1 = arith.constant 0 : i32
    return %c0_i32, %c0_i32_0 : i32, i32
  }
  func.func @transform_3(%arg0: i32) -> (i32, i32) {
    %c0_i32 = arith.constant 0 : i32
    %c0_i32_0 = arith.constant 0 : i32
    %c0_i32_1 = arith.constant 0 : i32
    return %c0_i32, %c0_i32_0 : i32, i32
  }
  func.func @transform_4(%arg0: i32) -> (i32, i32) {
    %c0_i32 = arith.constant 0 : i32
    %c0_i32_0 = arith.constant 0 : i32
    %c0_i32_1 = arith.constant 0 : i32
    return %c0_i32, %c0_i32_0 : i32, i32
  }
  func.func @transform_5(%arg0: i32) -> (i32, i32) {
    %c0_i32 = arith.constant 0 : i32
    %c0_i32_0 = arith.constant 0 : i32
    return %arg0, %c0_i32 : i32, i32
  }
}

</mosaic_0001>

<bundles_post_ra>
// kernel: net_forward.1
= control target key start
LH: loop header
LB: loop body
LE: loop exit
PB: predicated region body
PF: predicated region fallthrough
CT: control target
= control target key end

     0   :  { %vm29_vm0 = vcmask 261120   ;;  %vm66_vm1 = vcmask 523264   ;;  %vm90_vm2 = vcmask 31744   ;;  %s178_s1 = inlined_call_operand.vmem [shape: f32[32,64], index: 1, kind: input, shape index: {}]   ;;  %s179_s3 = inlined_call_operand.vmem [shape: f32[64,4], index: 3, kind: input, shape index: {}]   ;;  %s180_s0 = inlined_call_operand.vmem [shape: f32[8,32], index: 0, kind: input, shape index: {}]   ;;  %s181_s2 = inlined_call_operand.vmem [shape: f32[1,64], index: 2, kind: input, shape index: {}]   ;;  %s182_s4 = inlined_call_operand.vmem [shape: f32[1,4], index: 4, kind: input, shape index: {}]   ;;  %s183_s5 = inlined_call_operand.vmem [shape: f32[8,4], index: 5, kind: output, shape index: {}]  }
   0x1   :  { %v24_v0 = vld [vmem:[%s178_s1 + $0x18] sm:$0xff]  ;;  %v23_v1 = vld [vmem:[%s178_s1 + $0x10] sm:$0xff]  ;;  %v22_v3 = vld [vmem:[%s178_s1 + $0x8] sm:$0xff] }
   0x2   :  { %45 = vmatpush.msra.mxu0 %v24_v0  ;;  %v61_v2 = vld [vmem:[%s179_s3 + $0x38] sm:$0xff]  ;;  %v60_v4 = vld [vmem:[%s179_s3 + $0x30] sm:$0xff]  ;;  %v59_v5 = vld [vmem:[%s179_s3 + $0x28] sm:$0xff] }
   0x3   :  { %78 = vmatpush.msra.mxu1 %v61_v2  ;;  %v21_v6 = vld [vmem:[%s178_s1] sm:$0xff]  ;;  %v57_v9 = vld [vmem:[%s179_s3 + $0x18] sm:$0xff]  ;;  %v56_v10 = vld [vmem:[%s179_s3 + $0x10] sm:$0xff] }
   0x4   :  { %46 = vmatpush.msra.mxu0 %v23_v1  ;;  %v20_v7 = vld [vmem:[%s180_s0] sm:$0xff]  ;;  %v55_v11 = vld [vmem:[%s179_s3 + $0x8] sm:$0xff] }
   0x5   :  { %79 = vmatpush.msra.mxu1 %v60_v4  ;;  %v58_v8 = vld [vmem:[%s179_s3 + $0x20] sm:$0xff] }
   0x6   :  { %47 = vmatpush.msra.mxu0 %v22_v3  ;;  %v54_v12 = vld [vmem:[%s179_s3] sm:$0xff] }
   0x7   :  { %80 = vmatpush.msra.mxu1 %v59_v5  ;;  %v98_v13 = vld [vmem:[%s181_s2] ss:$0 sm:$0xff] }
   0x8   :  { %48 = vmatpush.msra.mxu0 %v21_v6  ;;  %v99_v17 = vld [vmem:[%s182_s4] ss:$0 sm:$0xff] }
   0x9   :  { %96 = vmatmul.msk.f32.vlgmr.msra.gmra.mxu0 %vm29_vm0, %v20_v7  ;;  %81 = vmatpush.msra.mxu1 %v58_v8 }
   0xb   :  { %82 = vmatpush.msra.mxu1 %v57_v9 }
   0xd   :  { %83 = vmatpush.msra.mxu1 %v56_v10 }
   0xf   :  { %84 = vmatpush.msra.mxu1 %v55_v11 }
  0x11   :  { %85 = vmatpush.msra.mxu1 %v54_v12 }
  0x86   :  { %v50_v14 = vpop.f32.mrf.mxu0 }
  0x87   :  { %v51_v15 = vadd.f32 %v98_v13, %v50_v14 }
  0x89   :  { %v53_v16 = vmax.f32 %v51_v15, 0.0 }
  0x8b   :  { %97 = vmatmul.msk.f32.vlgmr.msra.gmra.mxu1 %vm66_vm1, %v53_v16 }
 0x108   :  { %v87_v18 = vpop.f32.mrf.mxu1 }
 0x109   :  { %v88_v19 = vadd.f32 %v99_v17, %v87_v18 }
 0x10b   :  { %91 = vst.msk [vmem:[%s183_s5] sm:$0xff] %vm90_vm2, %v88_v19 }

</bundles_post_ra>
